<compile_context>
chip_gen: v5e
topology: v5e:2x2
jax: 0.10.0
libtpu: 0.0.40
codegen_flags: <defaults>
</compile_context>

<pallas_src>
import functools

import jax
import jax.numpy as jnp
from jax.experimental import pallas as pl
from jax.experimental.pallas import tpu as pltpu


def _round_up(x, m):
    return ((x + m - 1) // m) * m


def fcnet_kernel(x_ref, te_ref,
                 w1x_ref, w2h_ref, w3h_ref,
                 wt_all_ref, b_all_ref,
                 out_ref, *, hp):
    """One batch tile: 3 fused Linear(+ReLU) layers, te contribution hoisted."""
    x = x_ref[...]          # (TM, VSp)  bf16
    te = te_ref[...]        # (TM, Ep)   bf16

    # Single matmul for all three timestep-embedding contributions + biases.
    #   tb[:, 0:Hp]      -> te @ W1t^T + b1
    #   tb[:, Hp:2Hp]    -> te @ W2t^T + b2
    #   tb[:, 2Hp: ]     -> te @ W3t^T + b3
    tb = (jnp.dot(te, wt_all_ref[...], preferred_element_type=jnp.float32)
          + b_all_ref[...])
    t1 = tb[:, :hp]
    t2 = tb[:, hp:2 * hp]
    t3 = tb[:, 2 * hp:]

    # fc1: relu( [x, te] @ W1^T + b1 )
    h = jnp.dot(x, w1x_ref[...], preferred_element_type=jnp.float32) + t1
    h = jnp.maximum(h, 0.0)

    # fc2: relu( [h, te] @ W2^T + b2 )
    h = (jnp.dot(h.astype(w2h_ref.dtype), w2h_ref[...],
                 preferred_element_type=jnp.float32) + t2)
    h = jnp.maximum(h, 0.0)

    # fc3: [h, te] @ W3^T + b3   (no activation)
    out = (jnp.dot(h.astype(w3h_ref.dtype), w3h_ref[...],
                   preferred_element_type=jnp.float32) + t3)
    out_ref[...] = out.astype(out_ref.dtype)


def fcnet_forward(x, t, params, *, seq_length, vocab_size):
    """x: (B, 1, vocab_size, seq_length) float32, t: (B,) int32."""
    B = x.shape[0]
    VS = seq_length * vocab_size
    VSp = params["w1x"].shape[0]
    Hp = params["w2h"].shape[0]
    Op = params["w3h"].shape[1]
    Ep = params["emb"].shape[1]

    # --- batch tiling: TM rows per grid step, batch padded to a multiple ---
    TM = 128
    Bp = _round_up(B, 8)
    if Bp <= TM:
        TM = Bp
    else:
        Bp = _round_up(B, TM)
    grid = (Bp // TM,)

    # --- activation prep (bf16, zero-padded to lane-dense tiles) ---
    xb = x.reshape(B, -1).astype(jnp.bfloat16)                       # nn.Flatten
    x_pad = jnp.zeros((Bp, VSp), jnp.bfloat16).at[:B, :VS].set(xb)
    # TODO(synk): fuse the embedding gather into the kernel via
    # PrefetchScalarGridSpec(num_scalar_prefetch=1) + an in-kernel row gather.
    te = params["emb"][t]                                            # nn.Embedding
    te_pad = jnp.zeros((Bp, Ep), jnp.bfloat16).at[:B, :].set(te)

    # --- explicit VMEM budget: resident weights + double-buffered tiles ---
    def _nbytes(a):
        return a.size * jnp.dtype(a.dtype).itemsize

    weight_bytes = sum(_nbytes(params[k])
                       for k in ("w1x", "w2h", "w3h", "wt_all", "b_all"))
    act_bytes = (TM * VSp + TM * Ep) * 2 + TM * Op * 4
    est = 2 * (weight_bytes + act_bytes)          # conservative double-buffer bound
    vmem_limit = int(max(32 << 20, min(2 * est + (8 << 20), 56 << 20)))

    def w_spec(shape):
        return pl.BlockSpec(shape, lambda i: (0, 0))  # weight-stationary

    out = pl.pallas_call(
        functools.partial(fcnet_kernel, hp=Hp),
        out_shape=jax.ShapeDtypeStruct((Bp, Op), jnp.float32),
        grid=grid,
        in_specs=[
            pl.BlockSpec((TM, VSp), lambda i: (i, 0)),   # x tile
            pl.BlockSpec((TM, Ep), lambda i: (i, 0)),    # te tile
            w_spec((VSp, Hp)),                           # W1 (x part)
            w_spec((Hp, Hp)),                            # W2 (h part)
            w_spec((Hp, Op)),                            # W3 (h part)
            w_spec((Ep, 2 * Hp + Op)),                   # concat(W1t, W2t, W3t)
            w_spec((1, 2 * Hp + Op)),                    # concat(b1, b2, b3) f32
        ],
        out_specs=pl.BlockSpec((TM, Op), lambda i: (i, 0)),
        compiler_params=pltpu.CompilerParams(
            dimension_semantics=("parallel",),           # megacore on v7x
            vmem_limit_bytes=vmem_limit,
        ),
    )(x_pad, te_pad,
      params["w1x"], params["w2h"], params["w3h"],
      params["wt_all"], params["b_all"])

    # nn.Unflatten(1, (1, vocab_size, seq_length)): drop padding then reshape.
    return out[:B, :VS].reshape(B, 1, vocab_size, seq_length)


def init_params(key, seq_length, vocab_size, embedding_size, hidden_size,
                timesteps=1000):
    """Synthetic parameters matching the PyTorch module's shapes.

    Linear weights are generated as (out, in) like PyTorch, split along the
    input axis into x/h part and t-embed part, transposed to (in, out),
    zero-padded to 128-multiples, and stored in bf16 (biases stay f32).
    """
    VS = seq_length * vocab_size
    E, H = embedding_size, hidden_size
    VSp = _round_up(VS, 128)
    Ep = _round_up(E, 128)
    Hp = _round_up(H, 128)
    Op = _round_up(VS, 128)

    ks = jax.random.split(key, 4)

    def lin(k, out_f, in_f):
        bound = float(in_f) ** -0.5
        kw, kb = jax.random.split(k)
        w = jax.random.uniform(kw, (out_f, in_f), jnp.float32, -bound, bound)
        b = jax.random.uniform(kb, (out_f,), jnp.float32, -bound, bound)
        return w, b

    emb = jax.random.normal(ks[0], (timesteps, E), jnp.float32)
    w1, b1 = lin(ks[1], H, VS + E)
    w2, b2 = lin(ks[2], H, H + E)
    w3, b3 = lin(ks[3], VS, H + E)

    def pad2(a, rows, cols):
        return jnp.zeros((rows, cols), a.dtype).at[:a.shape[0], :a.shape[1]].set(a)

    # cat([x, te]) @ W^T == x @ Wx^T + te @ Wt^T ; store (in, out), zero-padded.
    w1x = pad2(w1[:, :VS].T, VSp, Hp)
    w1t = pad2(w1[:, VS:].T, Ep, Hp)
    w2h = pad2(w2[:, :H].T, Hp, Hp)
    w2t = pad2(w2[:, H:].T, Ep, Hp)
    w3h = pad2(w3[:, :H].T, Hp, Op)
    w3t = pad2(w3[:, H:].T, Ep, Op)

    b1p = jnp.zeros((1, Hp), jnp.float32).at[0, :H].set(b1)
    b2p = jnp.zeros((1, Hp), jnp.float32).at[0, :H].set(b2)
    b3p = jnp.zeros((1, Op), jnp.float32).at[0, :VS].set(b3)

    bf16 = jnp.bfloat16
    return {
        "emb": pad2(emb, timesteps, Ep).astype(bf16),
        "w1x": w1x.astype(bf16),
        "w2h": w2h.astype(bf16),
        "w3h": w3h.astype(bf16),
        "wt_all": jnp.concatenate([w1t, w2t, w3t], axis=1).astype(bf16),
        "b_all": jnp.concatenate([b1p, b2p, b3p], axis=1),      # f32
    }


def fcnet_reference(x, t, params, *, seq_length, vocab_size):
    """Pure-JAX reference mirroring the PyTorch forward (with the same bf16
    parameter rounding / f32 accumulation as the kernel)."""
    B = x.shape[0]
    VS = seq_length * vocab_size
    VSp = params["w1x"].shape[0]
    Hp = params["w2h"].shape[0]
    f32 = jnp.float32

    xb = x.reshape(B, -1).astype(jnp.bfloat16).astype(f32)
    x_flat = jnp.zeros((B, VSp), f32).at[:, :VS].set(xb)
    te = params["emb"][t].astype(f32)

    tb = te @ params["wt_all"].astype(f32) + params["b_all"]
    t1, t2, t3 = tb[:, :Hp], tb[:, Hp:2 * Hp], tb[:, 2 * Hp:]

    h = jax.nn.relu(x_flat @ params["w1x"].astype(f32) + t1)
    h = h.astype(jnp.bfloat16).astype(f32)
    h = jax.nn.relu(h @ params["w2h"].astype(f32) + t2)
    h = h.astype(jnp.bfloat16).astype(f32)
    o = h @ params["w3h"].astype(f32) + t3
    return o[:, :VS].reshape(B, 1, vocab_size, seq_length)


if __name__ == "__main__":
    seq_length, vocab_size = 8, 4
    embedding_size, hidden_size = 16, 32
    timesteps = 1000
    B = 2

    key = jax.random.PRNGKey(0)
    kx, kt, kp = jax.random.split(key, 3)

    x = jax.random.normal(kx, (B, 1, vocab_size, seq_length), jnp.float32)
    t = jax.random.randint(kt, (B,), 0, timesteps, jnp.int32)
    params = init_params(kp, seq_length, vocab_size, embedding_size,
                         hidden_size, timesteps)

    # jit the wrapper so the flatten/pad/gather plumbing fuses with the call.
    fwd = jax.jit(functools.partial(fcnet_forward,
                                    seq_length=seq_length,
                                    vocab_size=vocab_size))

    out = fwd(x, t, params)
    out = jax.block_until_ready(out)

    ref = fcnet_reference(x, t, params, seq_length=seq_length, vocab_size=vocab_size)
    assert out.shape == (B, 1, vocab_size, seq_length)
    assert jnp.allclose(out, ref, atol=1e-3, rtol=1e-3), \
        float(jnp.max(jnp.abs(out - ref)))

    print("KERNEL_OK")
</pallas_src>

<mosaic_0001>
module attributes {stable_mosaic.version = 11 : i64} {
  func.func @fcnet_kernel(%arg0: i32, %arg1: memref<8x128xbf16, #tpu.memory_space<vmem>>, %arg2: memref<8x128xbf16, #tpu.memory_space<vmem>>, %arg3: memref<128x128xbf16, #tpu.memory_space<vmem>>, %arg4: memref<128x128xbf16, #tpu.memory_space<vmem>>, %arg5: memref<128x128xbf16, #tpu.memory_space<vmem>>, %arg6: memref<128x384xbf16, #tpu.memory_space<vmem>>, %arg7: memref<1x384xf32, #tpu.memory_space<vmem>>, %arg8: memref<8x128xf32, #tpu.memory_space<vmem>>) attributes {dimension_semantics = [#tpu.dimension_semantics<parallel>], iteration_bounds = array<i64: 1>, scalar_prefetch = 0 : i64, scratch_operands = 0 : i64, tpu.core_type = #tpu.core_type<tc>, window_params = [{transform_indices = @transform_0, window_bounds = array<i64: 8, 128>}, {transform_indices = @transform_1, window_bounds = array<i64: 8, 128>}, {pipeline_mode = #tpu.pipeline_mode<synchronous>, transform_indices = @transform_2, window_bounds = array<i64: 128, 128>}, {pipeline_mode = #tpu.pipeline_mode<synchronous>, transform_indices = @transform_3, window_bounds = array<i64: 128, 128>}, {pipeline_mode = #tpu.pipeline_mode<synchronous>, transform_indices = @transform_4, window_bounds = array<i64: 128, 128>}, {pipeline_mode = #tpu.pipeline_mode<synchronous>, transform_indices = @transform_5, window_bounds = array<i64: 128, 384>}, {pipeline_mode = #tpu.pipeline_mode<synchronous>, transform_indices = @transform_6, window_bounds = array<i64: 1, 384>}, {transform_indices = @transform_7, window_bounds = array<i64: 8, 128>}]} {
    %c0 = arith.constant 0 : index
    %c0_0 = arith.constant 0 : index
    %0 = vector.load %arg1[%c0, %c0_0] : memref<8x128xbf16, #tpu.memory_space<vmem>>, vector<8x128xbf16>
    %c0_1 = arith.constant 0 : index
    %c0_2 = arith.constant 0 : index
    %1 = vector.load %arg2[%c0_1, %c0_2] : memref<8x128xbf16, #tpu.memory_space<vmem>>, vector<8x128xbf16>
    %c0_3 = arith.constant 0 : index
    %c0_4 = arith.constant 0 : index
    %2 = vector.load %arg6[%c0_3, %c0_4] : memref<128x384xbf16, #tpu.memory_space<vmem>>, vector<128x384xbf16>
    %cst = arith.constant dense<0.000000e+00> : vector<8x384xf32>
    %3 = tpu.matmul %1, %2, %cst {dimension_numbers = #tpu.dot_dimension_numbers<[1], [0], [0], [1], [0, 0, 1, 1], [], []>} : vector<8x128xbf16>, vector<128x384xbf16>, vector<8x384xf32> -> vector<8x384xf32>
    %c0_5 = arith.constant 0 : index
    %c0_6 = arith.constant 0 : index
    %4 = vector.load %arg7[%c0_5, %c0_6] : memref<1x384xf32, #tpu.memory_space<vmem>>, vector<1x384xf32>
    %5 = vector.broadcast %4 : vector<1x384xf32> to vector<8x384xf32>
    %6 = arith.addf %3, %5 : vector<8x384xf32>
    %7 = vector.extract_strided_slice %6 {offsets = [0, 0], sizes = [8, 128], strides = [1, 1]} : vector<8x384xf32> to vector<8x128xf32>
    %8 = vector.extract_strided_slice %6 {offsets = [0, 128], sizes = [8, 128], strides = [1, 1]} : vector<8x384xf32> to vector<8x128xf32>
    %9 = vector.extract_strided_slice %6 {offsets = [0, 256], sizes = [8, 128], strides = [1, 1]} : vector<8x384xf32> to vector<8x128xf32>
    %c0_7 = arith.constant 0 : index
    %c0_8 = arith.constant 0 : index
    %10 = vector.load %arg3[%c0_7, %c0_8] : memref<128x128xbf16, #tpu.memory_space<vmem>>, vector<128x128xbf16>
    %cst_9 = arith.constant dense<0.000000e+00> : vector<8x128xf32>
    %11 = tpu.matmul %0, %10, %cst_9 {dimension_numbers = #tpu.dot_dimension_numbers<[1], [0], [0], [1], [0, 0, 1, 1], [], []>} : vector<8x128xbf16>, vector<128x128xbf16>, vector<8x128xf32> -> vector<8x128xf32>
    %12 = arith.addf %11, %7 : vector<8x128xf32>
    %cst_10 = arith.constant 0.000000e+00 : f32
    %13 = vector.broadcast %cst_10 : f32 to vector<8x128xf32>
    %14 = arith.maximumf %12, %13 : vector<8x128xf32>
    %15 = arith.truncf %14 : vector<8x128xf32> to vector<8x128xbf16>
    %c0_11 = arith.constant 0 : index
    %c0_12 = arith.constant 0 : index
    %16 = vector.load %arg4[%c0_11, %c0_12] : memref<128x128xbf16, #tpu.memory_space<vmem>>, vector<128x128xbf16>
    %cst_13 = arith.constant dense<0.000000e+00> : vector<8x128xf32>
    %17 = tpu.matmul %15, %16, %cst_13 {dimension_numbers = #tpu.dot_dimension_numbers<[1], [0], [0], [1], [0, 0, 1, 1], [], []>} : vector<8x128xbf16>, vector<128x128xbf16>, vector<8x128xf32> -> vector<8x128xf32>
    %18 = arith.addf %17, %8 : vector<8x128xf32>
    %cst_14 = arith.constant 0.000000e+00 : f32
    %19 = vector.broadcast %cst_14 : f32 to vector<8x128xf32>
    %20 = arith.maximumf %18, %19 : vector<8x128xf32>
    %21 = arith.truncf %20 : vector<8x128xf32> to vector<8x128xbf16>
    %c0_15 = arith.constant 0 : index
    %c0_16 = arith.constant 0 : index
    %22 = vector.load %arg5[%c0_15, %c0_16] : memref<128x128xbf16, #tpu.memory_space<vmem>>, vector<128x128xbf16>
    %cst_17 = arith.constant dense<0.000000e+00> : vector<8x128xf32>
    %23 = tpu.matmul %21, %22, %cst_17 {dimension_numbers = #tpu.dot_dimension_numbers<[1], [0], [0], [1], [0, 0, 1, 1], [], []>} : vector<8x128xbf16>, vector<128x128xbf16>, vector<8x128xf32> -> vector<8x128xf32>
    %24 = arith.addf %23, %9 : vector<8x128xf32>
    %c0_18 = arith.constant 0 : index
    %c0_19 = arith.constant 0 : index
    %25 = vector.load %arg8[%c0_18, %c0_19] : memref<8x128xf32, #tpu.memory_space<vmem>>, vector<8x128xf32>
    tpu.vector_store %arg8[%c0_18, %c0_19], %24 {strides = array<i32>} : memref<8x128xf32, #tpu.memory_space<vmem>>, vector<8x128xf32>,
    return
  }
  func.func @transform_0(%arg0: i32) -> (i32, i32) {
    %c0_i32 = arith.constant 0 : i32
    %c0_i32_0 = arith.constant 0 : i32
    return %arg0, %c0_i32 : i32, i32
  }
  func.func @transform_1(%arg0: i32) -> (i32, i32) {
    %c0_i32 = arith.constant 0 : i32
    %c0_i32_0 = arith.constant 0 : i32
    return %arg0, %c0_i32 : i32, i32
  }
  func.func @transform_2(%arg0: i32) -> (i32, i32) {
    %c0_i32 = arith.constant 0 : i32
    %c0_i32_0 = arith.constant 0 : i32
    %c0_i32_1 = arith.constant 0 : i32
    return %c0_i32, %c0_i32_0 : i32, i32
  }
  func.func @transform_3(%arg0: i32) -> (i32, i32) {
    %c0_i32 = arith.constant 0 : i32
    %c0_i32_0 = arith.constant 0 : i32
    %c0_i32_1 = arith.constant 0 : i32
    return %c0_i32, %c0_i32_0 : i32, i32
  }
  func.func @transform_4(%arg0: i32) -> (i32, i32) {
    %c0_i32 = arith.constant 0 : i32
    %c0_i32_0 = arith.constant 0 : i32
    %c0_i32_1 = arith.constant 0 : i32
    return %c0_i32, %c0_i32_0 : i32, i32
  }
  func.func @transform_5(%arg0: i32) -> (i32, i32) {
    %c0_i32 = arith.constant 0 : i32
    %c0_i32_0 = arith.constant 0 : i32
    %c0_i32_1 = arith.constant 0 : i32
    return %c0_i32, %c0_i32_0 : i32, i32
  }
  func.func @transform_6(%arg0: i32) -> (i32, i32) {
    %c0_i32 = arith.constant 0 : i32
    %c0_i32_0 = arith.constant 0 : i32
    %c0_i32_1 = arith.constant 0 : i32
    return %c0_i32, %c0_i32_0 : i32, i32
  }
  func.func @transform_7(%arg0: i32) -> (i32, i32) {
    %c0_i32 = arith.constant 0 : i32
    %c0_i32_0 = arith.constant 0 : i32
    return %arg0, %c0_i32 : i32, i32
  }
}

</mosaic_0001>

<bundles_post_ra>
// kernel: fcnet_forward.1
= control target key start
LH: loop header
LB: loop body
LE: loop exit
PB: predicated region body
PF: predicated region fallthrough
CT: control target
= control target key end

     0   :  { %12 = vsyncpa [#allocation3], 0  ;;  %s968_s0 = inlined_call_operand.vmem [shape: bf16[8,128], index: 0, kind: input, shape index: {}]   ;;  %s969_s1 = inlined_call_operand.vmem [shape: bf16[8,128], index: 1, kind: input, shape index: {}]   ;;  %s970_s2 = inlined_call_operand.hbm [shape: bf16[128,128], index: 2, kind: input, shape index: {}]   ;;  %s971_s3 = inlined_call_operand.hbm [shape: bf16[128,128], index: 3, kind: input, shape index: {}]   ;;  %s972_s4 = inlined_call_operand.hbm [shape: bf16[128,128], index: 4, kind: input, shape index: {}]   ;;  %s973_s5 = inlined_call_operand.hbm [shape: bf16[128,384], index: 5, kind: input, shape index: {}]   ;;  %s974_s6 = inlined_call_operand.vmem [shape: f32[1,384], index: 6, kind: input, shape index: {}]   ;;  %s975_s7 = inlined_call_operand.vmem [shape: f32[8,128], index: 7, kind: output, shape index: {}]  }
   0x1   :  { %13 = vsyncpa [#allocation5], 0 }
   0x2   :  { %14 = vsyncpa [#allocation8], 0  ;;  %s36_s26 = sshll.u32 %s971_s3, 4  ;;  %s891_s27 = smov [#allocation4]   ;;  %s37_s26 = int_to_ptr.hbm [resolvable:$true] %s36_s26 }
   0x3   :  { %s38_s28 = sshll.u32 %s891_s27, 4  ;;  %s23_s8 = sshll.u32 %s970_s2, 4  ;;  %s39_s28 = int_to_ptr.vmem [resolvable:$true] %s38_s28  ;;  %s24_s8 = int_to_ptr.hbm [resolvable:$true] %s23_s8 }
   0x4   :  { %s892_s9 = smov 64   ;;  %s893_s10 = smov 4  }
   0x5   :  { %44 = dma.hbm_to_vmem [thread:$0]  %s37_s26, 1024, %s39_s28, [#allocation5], %s892_s9, %s892_s9, %s893_s10  }
   0x6   :  { %s894_s11 = smov [#allocation2]   ;;  %s49_s15 = sshll.u32 %s972_s4, 4  ;;  %s50_s15 = int_to_ptr.hbm [resolvable:$true] %s49_s15 }
   0x7   :  { %s25_s12 = sshll.u32 %s894_s11, 4  ;;  %s62_s17 = sshll.u32 %s973_s5, 4  ;;  %s26_s12 = int_to_ptr.vmem [resolvable:$true] %s25_s12  ;;  %s63_s17 = int_to_ptr.hbm [resolvable:$true] %s62_s17 }
   0x8   :  { %31 = dma.hbm_to_vmem [thread:$0]  %s24_s8, 1024, %s26_s12, [#allocation3], %s892_s9, %s892_s9, %s893_s10  }
   0x9   :  { %s895_s18 = smov [#allocation6]   ;;  %s896_s2 = smov [#allocation7]  }
   0xa   :  { %s51_s19 = sshll.u32 %s895_s18, 4  ;;  %s64_s20 = sshll.u32 %s896_s2, 4  ;;  %s52_s19 = int_to_ptr.vmem [resolvable:$true] %s51_s19  ;;  %s65_s20 = int_to_ptr.vmem [resolvable:$true] %s64_s20 }
   0xb   :  { %57 = dma.hbm_to_vmem [thread:$0]  %s50_s15, 1024, %s52_s19, [#allocation5], %s892_s9, %s892_s9, %s893_s10  }
   0xc   :  { %s897_s21 = smov 192   ;;  %s898_s22 = smov 12  }
   0xd   :  { %70 = dma.hbm_to_vmem [thread:$0]  %s63_s17, 3072, %s65_s20, [#allocation8], %s897_s21, %s897_s21, %s898_s22  }
   0xe   :  { %885 = dma.done.wait [#allocation3], 1024  }
   0xf   :  { %886 = vsyncadd [#allocation3], 4294966272 }
  0x10   :  { %887 = dma.done.wait [#allocation5], 2048  }
  0x11   :  { %888 = vsyncadd [#allocation5], 4294965248 }
  0x12   :  { %889 = dma.done.wait [#allocation8], 3072  }
  0x13   :  { %890 = vsyncadd [#allocation8], 4294964224  ;;  %v627_v0 = vld [vmem:[#allocation7 + $0xa8] sm:$0xf]  ;;  %v755_v1 = vld [vmem:[#allocation7 + $0xb0] sm:$0xf0] }
  0x14   :  { %v764_v2 = vld [vmem:[#allocation2 + $0x38] sm:$0xff]  ;;  %v628_v3 = vor.u32 %v755_v1, %v627_v0  ;;  %v615_v4 = vld [vmem:[#allocation7 + $0x90] sm:$0xf]  ;;  %v749_v9 = vld [vmem:[#allocation7 + $0x80] sm:$0xf0] }
  0x15   :  { %v752_v5 = vld [vmem:[#allocation7 + $0x98] sm:$0xf0]  ;;  %362 = vmatpush.bf16.msra.mxu3 %v764_v2  ;;  %v763_v6 = vld [vmem:[#allocation2 + $0x30] sm:$0xff]  ;;  %v603_v8 = vld [vmem:[#allocation7 + $0x78] sm:$0xf] }
  0x16   :  { %259 = vmatpush.bf16.msra.mxu0 %v628_v3  ;;  %v616_v7 = vor.u32 %v752_v5, %v615_v4  ;;  %v762_v10 = vld [vmem:[#allocation2 + $0x28] sm:$0xff]  ;;  %v604_v11 = vor.u32 %v749_v9, %v603_v8  ;;  %v591_v12 = vld [vmem:[#allocation7 + $0x60] sm:$0xf]  ;;  %v629_v15 = vld [vmem:[#allocation7 + $0xb4] sm:$0xf0] }
  0x17   :  { %v746_v13 = vld [vmem:[#allocation7 + $0x68] sm:$0xf0]  ;;  %v751_v16 = vld [vmem:[#allocation7 + $0x94] sm:$0xf]  ;;  %v617_v17 = vld [vmem:[#allocation7 + $0x9c] sm:$0xf0] }
  0x18   :  { %v754_v14 = vld [vmem:[#allocation7 + $0xac] sm:$0xf]  ;;  %v761_v18 = vld [vmem:[#allocation2 + $0x20] sm:$0xff]  ;;  %v592_v20 = vor.u32 %v746_v13, %v591_v12  ;;  %v579_v21 = vld [vmem:[#allocation7 + $0x48] sm:$0xf]  ;;  %v620_v23 = vor.u32 %v751_v16, %v617_v17 }
  0x19   :  { %363 = vmatpush.bf16.msra.mxu3 %v763_v6  ;;  %v632_v19 = vor.u32 %v754_v14, %v629_v15  ;;  %v743_v22 = vld [vmem:[#allocation7 + $0x50] sm:$0xf0]  ;;  %v748_v24 = vld [vmem:[#allocation7 + $0x7c] sm:$0xf]  ;;  %v605_v25 = vld [vmem:[#allocation7 + $0x84] sm:$0xf0] }
  0x1a   :  { %260 = vmatpush.bf16.msra.mxu0 %v616_v7  ;;  %v760_v26 = vld [vmem:[#allocation2 + $0x18] sm:$0xff]  ;;  %v580_v27 = vor.u32 %v743_v22, %v579_v21  ;;  %v567_v28 = vld [vmem:[#allocation7 + $0x30] sm:$0xf]  ;;  %v608_v30 = vor.u32 %v748_v24, %v605_v25  ;;  %v745_v31 = vld [vmem:[#allocation7 + $0x64] sm:$0xf] }
  0x1b   :  { %272 = vmatpush.bf16.msra.mxu1 %v632_v19  ;;  %v740_v29 = vld [vmem:[#allocation7 + $0x38] sm:$0xf0]  ;;  %v593_v32 = vld [vmem:[#allocation7 + $0x6c] sm:$0xf0]  ;;  %v555_v35 = vld [vmem:[#allocation7 + $0x18] sm:$0xf] }
  0x1c   :  { %v759_v33 = vld [vmem:[#allocation2 + $0x10] sm:$0xff]  ;;  %v568_v34 = vor.u32 %v740_v29, %v567_v28  ;;  %v737_v36 = vld [vmem:[#allocation7 + $0x20] sm:$0xf0]  ;;  %v596_v37 = vor.u32 %v745_v31, %v593_v32  ;;  %v742_v38 = vld [vmem:[#allocation7 + $0x4c] sm:$0xf] }
  0x1d   :  { %364 = vmatpush.bf16.msra.mxu3 %v762_v10  ;;  %v581_v39 = vld [vmem:[#allocation7 + $0x54] sm:$0xf0]  ;;  %v758_v40 = vld [vmem:[#allocation2 + $0x8] sm:$0xff]  ;;  %v556_v41 = vor.u32 %v737_v36, %v555_v35  ;;  %v543_v42 = vld [vmem:[#allocation7] sm:$0xf] }
  0x1e   :  { %261 = vmatpush.bf16.msra.mxu0 %v604_v11  ;;  %v734_v43 = vld [vmem:[#allocation7 + $0x8] sm:$0xf0]  ;;  %v584_v44 = vor.u32 %v742_v38, %v581_v39  ;;  %v739_v45 = vld [vmem:[#allocation7 + $0x34] sm:$0xf]  ;;  %v569_v46 = vld [vmem:[#allocation7 + $0x3c] sm:$0xf0] }
  0x1f   :  { %273 = vmatpush.bf16.msra.mxu1 %v620_v23  ;;  %v757_v47 = vld [vmem:[#allocation2] sm:$0xff]  ;;  %v544_v48 = vor.u32 %v734_v43, %v543_v42  ;;  %v772_v49 = vld [vmem:[#allocation4 + $0x38] sm:$0xff]  ;;  %v572_v50 = vor.u32 %v739_v45, %v569_v46  ;;  %v557_v52 = vld [vmem:[#allocation7 + $0x24] sm:$0xf0] }
  0x20   :  { %v736_v51 = vld [vmem:[#allocation7 + $0x1c] sm:$0xf]  ;;  %v89_v53 = vld [vmem:[%s968_s0] sm:$0xf]  ;;  %v771_v55 = vld [vmem:[#allocation4 + $0x30] sm:$0xff] }
  0x21   :  { %365 = vmatpush.bf16.msra.mxu3 %v761_v18  ;;  %v957_v54 = vld [vmem:[%s969_s1] sm:$0xf]  ;;  %v560_v56 = vor.u32 %v736_v51, %v557_v52  ;;  %v770_v57 = vld [vmem:[#allocation4 + $0x28] sm:$0xff]  ;;  %v768_v59 = vld [vmem:[#allocation4 + $0x18] sm:$0xff] }
  0x22   :  { %262 = vmatpush.bf16.msra.mxu0 %v592_v20  ;;  %v769_v58 = vld [vmem:[#allocation4 + $0x20] sm:$0xff]  ;;  %v545_v61 = vld [vmem:[#allocation7 + $0xc] sm:$0xf0]  ;;  %v766_v0 = vld [vmem:[#allocation4 + $0x8] sm:$0xff] }
  0x23   :  { %274 = vmatpush.bf16.msra.mxu1 %v608_v30  ;;  %v733_v60 = vld [vmem:[#allocation7 + $0x4] sm:$0xf]  ;;  %v767_v63 = vld [vmem:[#allocation4 + $0x10] sm:$0xff]  ;;  %v756_v3 = vld [vmem:[#allocation7 + $0xb8] sm:$0xf0] }
  0x24   :  { %v548_v62 = vor.u32 %v733_v60, %v545_v61  ;;  %v765_v1 = vld [vmem:[#allocation4] sm:$0xff]  ;;  %v635_v2 = vld [vmem:[#allocation7 + $0xb0] sm:$0xf]  ;;  %v623_v4 = vld [vmem:[#allocation7 + $0x98] sm:$0xf] }
  0x25   :  { %366 = vmatpush.bf16.msra.mxu3 %v760_v26  ;;  %v636_v5 = vor.u32 %v756_v3, %v635_v2  ;;  %v753_v6 = vld [vmem:[#allocation7 + $0xa0] sm:$0xf0]  ;;  %v780_v7 = vld [vmem:[#allocation6 + $0x38] sm:$0xff]  ;;  %v611_v9 = vld [vmem:[#allocation7 + $0x80] sm:$0xf] }
  0x26   :  { %263 = vmatpush.bf16.msra.mxu0 %v580_v27  ;;  %v624_v8 = vor.u32 %v753_v6, %v623_v4  ;;  %v750_v10 = vld [vmem:[#allocation7 + $0x88] sm:$0xf0]  ;;  %v779_v11 = vld [vmem:[#allocation6 + $0x30] sm:$0xff]  ;;  %v599_v13 = vld [vmem:[#allocation7 + $0x68] sm:$0xf] }
  0x27   :  { %275 = vmatpush.bf16.msra.mxu1 %v596_v37  ;;  %285 = vmatpush.bf16.msra.mxu2 %v636_v5  ;;  %v612_v12 = vor.u32 %v750_v10, %v611_v9  ;;  %v747_v14 = vld [vmem:[#allocation7 + $0x70] sm:$0xf0]  ;;  %v778_v15 = vld [vmem:[#allocation6 + $0x28] sm:$0xff]  ;;  %v587_v17 = vld [vmem:[#allocation7 + $0x50] sm:$0xf] }
  0x28   :  { %v600_v16 = vor.u32 %v747_v14, %v599_v13  ;;  %v744_v18 = vld [vmem:[#allocation7 + $0x58] sm:$0xf0]  ;;  %v777_v19 = vld [vmem:[#allocation6 + $0x20] sm:$0xff]  ;;  %v575_v22 = vld [vmem:[#allocation7 + $0x38] sm:$0xf] }
  0x29   :  { %367 = vmatpush.bf16.msra.mxu3 %v759_v33  ;;  %v123_v20 = vld [vmem:[%s974_s6] sm:$0x7]  ;;  %v588_v21 = vor.u32 %v744_v18, %v587_v17  ;;  %v741_v23 = vld [vmem:[#allocation7 + $0x40] sm:$0xf0]  ;;  %v738_v28 = vld [vmem:[#allocation7 + $0x28] sm:$0xf0] }
  0x2a   :  { %264 = vmatpush.bf16.msra.mxu0 %v568_v34  ;;  %v125_v24 = vperm.slane %v123_v20, 0  ;;  %v576_v26 = vor.u32 %v741_v23, %v575_v22  ;;  %v563_v27 = vld [vmem:[#allocation7 + $0x20] sm:$0xf]  ;;  %v551_v37 = vld [vmem:[#allocation7 + $0x8] sm:$0xf]  ;;  %v776_v39 = vld [vmem:[#allocation6 + $0x18] sm:$0xff] }
  0x2b   :  { %276 = vmatpush.bf16.msra.mxu1 %v584_v44  ;;  %286 = vmatpush.bf16.msra.mxu2 %v624_v8  ;;  %v564_v30 = vor.u32 %v738_v28, %v563_v27  ;;  %v735_v38 = vld [vmem:[#allocation7 + $0x10] sm:$0xf0]  ;;  %v774_v44 = vld [vmem:[#allocation6 + $0x8] sm:$0xff]  ;;  %v773_v45 = vld [vmem:[#allocation6] sm:$0xff]  ;;  %v126_v46 = vperm.slane %v123_v20, 1 }
  0x2d   :  { %368 = vmatpush.bf16.msra.mxu3 %v758_v40  ;;  %v552_v40 = vor.u32 %v735_v38, %v551_v37 }
  0x2e   :  { %265 = vmatpush.bf16.msra.mxu0 %v556_v41  ;;  %v775_v41 = vld [vmem:[#allocation6 + $0x10] sm:$0xff] }
  0x2f   :  { %277 = vmatpush.bf16.msra.mxu1 %v572_v50  ;;  %287 = vmatpush.bf16.msra.mxu2 %v612_v12 }
  0x31   :  { %369 = vmatpush.bf16.msra.mxu3 %v757_v47 }
  0x32   :  { %266 = vmatpush.bf16.msra.mxu0 %v544_v48 }
  0x33   :  { %278 = vmatpush.bf16.msra.mxu1 %v560_v56  ;;  %288 = vmatpush.bf16.msra.mxu2 %v600_v16  ;;  %v127_v56 = vperm.slane %v123_v20, 2 }
  0x34   :  { %370 = vmatmul.bf16.vlgmr.msra.gmra.mxu3 %v89_v53 }
  0x35   :  { %267 = vmatmul.bf16.vlgmr.msra.gmra.mxu0 %v957_v54 }
  0x36   :  { %441 = vmatpush.bf16.msrb.mxu0 %v772_v49 }
  0x37   :  { %279 = vmatpush.bf16.msra.mxu1 %v548_v62  ;;  %289 = vmatpush.bf16.msra.mxu2 %v588_v21 }
  0x3a   :  { %442 = vmatpush.bf16.msrb.mxu0 %v771_v55  ;;  %280 = vmatmul.bf16.vlgmr.msra.gmra.mxu1 %v957_v54 }
  0x3b   :  { %520 = vmatpush.bf16.msrb.mxu1 %v780_v7  ;;  %290 = vmatpush.bf16.msra.mxu2 %v576_v26 }
  0x3e   :  { %443 = vmatpush.bf16.msrb.mxu0 %v770_v57 }
  0x3f   :  { %521 = vmatpush.bf16.msrb.mxu1 %v779_v11  ;;  %291 = vmatpush.bf16.msra.mxu2 %v564_v30 }
  0x42   :  { %444 = vmatpush.bf16.msrb.mxu0 %v769_v58 }
  0x43   :  { %522 = vmatpush.bf16.msrb.mxu1 %v778_v15  ;;  %292 = vmatpush.bf16.msra.mxu2 %v552_v40 }
  0x46   :  { %445 = vmatpush.bf16.msrb.mxu0 %v768_v59  ;;  %293 = vmatmul.bf16.vlgmr.msra.gmra.mxu2 %v957_v54 }
  0x47   :  { %523 = vmatpush.bf16.msrb.mxu1 %v777_v19 }
  0x4a   :  { %446 = vmatpush.bf16.msrb.mxu0 %v767_v63 }
  0x4b   :  { %524 = vmatpush.bf16.msrb.mxu1 %v776_v39 }
  0x4e   :  { %447 = vmatpush.bf16.msrb.mxu0 %v766_v0 }
  0x4f   :  { %525 = vmatpush.bf16.msrb.mxu1 %v775_v41 }
  0x52   :  { %448 = vmatpush.bf16.msrb.mxu0 %v765_v1 }
  0x53   :  { %526 = vmatpush.bf16.msrb.mxu1 %v774_v44 }
  0x57   :  { %527 = vmatpush.bf16.msrb.mxu1 %v773_v45 }
  0xb2   :  { %v268_v25 = vpop.f32.mrf.mxu0 }
  0xb3   :  { %v269_v29 = vadd.f32 %v268_v25, %v125_v24 }
  0xb7   :  { %v371_v31 = vpop.f32.mrf.mxu3  ;;  %v281_v42 = vpop.f32.mrf.mxu1 }
  0xb8   :  { %v372_v32 = vadd.f32 %v371_v31, %v269_v29  ;;  %v282_v47 = vadd.f32 %v281_v42, %v126_v46 }
  0xba   :  { %v375_v33 = vmax.f32 %v372_v32, 0.0  ;;  %v270_v34 = vpop.f32.mrf.mxu0 }
  0xbc   :  { %v376_v35 = vpack.c.bf16 %v375_v33, %v375_v33 }
  0xbe   :  { %449 = vmatmul.bf16.vlgmr.msrb.gmra.mxu0 %v376_v35 }
  0xbf   :  { %v373_v36 = vpop.f32.mrf.mxu3  ;;  %v283_v43 = vpop.f32.mrf.mxu1 }
  0xc9   :  { %v294_v53 = vpop.f32.mrf.mxu2 }
  0xca   :  { %v295_v57 = vadd.f32 %v294_v53, %v127_v56 }
  0xd1   :  { %v296_v55 = vpop.f32.mrf.mxu2 }
 0x13b   :  { %v450_v48 = vpop.f32.mrf.mxu0 }
 0x13c   :  { %v451_v49 = vadd.f32 %v450_v48, %v282_v47 }
 0x13e   :  { %v454_v50 = vmax.f32 %v451_v49, 0.0 }
 0x140   :  { %v455_v51 = vpack.c.bf16 %v454_v50, %v454_v50 }
 0x142   :  { %528 = vmatmul.bf16.vlgmr.msrb.gmra.mxu1 %v455_v51 }
 0x143   :  { %v452_v52 = vpop.f32.mrf.mxu0 }
 0x1bf   :  { %v529_v54 = vpop.f32.mrf.mxu1 }
 0x1c0   :  { %v530_v58 = vadd.f32 %v529_v54, %v295_v57 }
 0x1c2   :  { %533 = vst [vmem:[%s975_s7] sm:$0xff] %v530_v58 }
 0x1c7   :  { %v531_v59 = vpop.f32.mrf.mxu1 }
 0x1c8   :  { %538 = vsyncpa [#allocation3], 1 }
 0x1c9   :  { %539 = vsyncpa [#allocation5], 1 }
 0x1ca   :  { %540 = vsyncpa [#allocation8], 1 }

</bundles_post_ra>
